<compile_context>
chip_gen: v7x
topology: tpu7x:2x2x1
jax: 0.10.0
libtpu: 0.0.40
codegen_flags: <defaults>
</compile_context>

<pallas_src>
import functools

import jax
import jax.numpy as jnp
from jax.experimental import pallas as pl
from jax.experimental.pallas import tpu as pltpu

LANE = 128


def _round_up(n, m):
    return ((n + m - 1) // m) * m


def _choose_batch_tile(B):
    """Largest MXU-friendly batch tile that evenly divides B (falls back to B)."""
    for tm in (512, 256, 128, 64, 32, 16, 8):
        if B % tm == 0:
            return tm
    return B


def _fused_head_kernel(*refs, num_layers, out_dim):
    """Fully fused head for one batch tile:
       (dot + bias + ReLU) x (L-1) -> dot + bias -> masked f32 softmax.

    refs = (x_ref, w0_ref, b0_ref, ..., w{L-1}_ref, b{L-1}_ref, o_ref)
    Weights are bf16 at true shapes (last layer lane-padded); biases are f32.
    """
    x_ref = refs[0]
    o_ref = refs[-1]
    wb = refs[1:-1]

    h = x_ref[...]  # f32 (TM, in_dim); cast to bf16 just-in-time below
    for i in range(num_layers):
        w_ref = wb[2 * i]
        b_ref = wb[2 * i + 1]
        # bf16 x bf16 MXU matmul, f32 accumulation; epilogue stays in f32.
        h = jnp.dot(h.astype(w_ref.dtype), w_ref[...],
                    preferred_element_type=jnp.float32)
        h = h + b_ref[...]
        if i < num_layers - 1:
            h = jnp.maximum(h, 0.0)  # ReLU (Dropout is identity at eval)

    # Masked softmax over the (lane-padded) feature axis, all in f32 so the
    # -1e30 mask underflows cleanly in exp and padded lanes contribute 0.
    col = jax.lax.broadcasted_iota(jnp.int32, h.shape, 1)
    logits = jnp.where(col < out_dim, h, -1e30)
    m = jnp.max(logits, axis=-1, keepdims=True)
    e = jnp.exp(logits - m)
    denom = jnp.sum(e, axis=-1, keepdims=True)
    r = pl.reciprocal(denom, approx=True)   # EUP slot, ~free
    r = r * (2.0 - denom * r)               # one Newton step -> near-exact normalization
    o_ref[...] = e * r


def init_mlp_params(key, in_dim, out_dim, hidden_dim, num_layers):
    """Deterministic unpadded params: list of (W, b), W:(fan_in, fan_out), b:(1, fan_out)."""
    dims = []
    for i in range(num_layers):
        fi = in_dim if i == 0 else hidden_dim
        fo = out_dim if i == num_layers - 1 else hidden_dim
        dims.append((fi, fo))
    params = []
    for fi, fo in dims:
        kw, kb, key = jax.random.split(key, 3)
        bound = 1.0 / jnp.sqrt(jnp.float32(fi))  # PyTorch nn.Linear default init range
        W = jax.random.uniform(kw, (fi, fo), jnp.float32, -bound, bound)
        b = jax.random.uniform(kb, (1, fo), jnp.float32, -bound, bound)
        params.append((W, b))
    return params


def prep_params(params):
    """bf16 weights at TRUE shapes (no HBM lane inflation); only the last layer's
    fan_out is zero-padded to a 128-lane multiple so the logits tile is lane-dense
    for the masked softmax and the unmasked store. Biases stay f32."""
    prepped = []
    last = len(params) - 1
    for i, (W, b) in enumerate(params):
        fi, fo = W.shape
        if i == last:
            fop = _round_up(fo, LANE)
            Wp = jnp.zeros((fi, fop), jnp.bfloat16).at[:, :fo].set(W.astype(jnp.bfloat16))
            bp = jnp.zeros((1, fop), jnp.float32).at[:, :fo].set(b)
        else:
            Wp = W.astype(jnp.bfloat16)
            bp = b
        prepped.append((Wp, bp))
    return prepped


def mlpmixer_forward(x_nchw, prepped_params, *, out_dim):
    """MLPMixer forward per the provided module:
       (empty mixer loop — no-op) -> Flatten -> fused MLP head + softmax."""
    B = x_nchw.shape[0]

    # token_mixing / channel_mixing ModuleLists are empty in the spec __init__,
    # so the mixer loop applies no transformation.

    x = x_nchw.reshape(B, -1)  # nn.Flatten(); stays f32, cast to bf16 in-kernel
    in_dim = x.shape[1]
    num_layers = len(prepped_params)
    out_pad = prepped_params[-1][0].shape[1]

    tm = _choose_batch_tile(B)
    grid = (B // tm,)

    flat_params = []
    # x: batch-tiled; last dim is the full array extent (no 128-pad needed).
    in_specs = [pl.BlockSpec((tm, in_dim), lambda i: (i, 0))]
    for Wp, bp in prepped_params:
        flat_params += [Wp, bp]
        # Constant index_maps: weights/biases DMA'd once, VMEM-resident across tiles.
        in_specs.append(pl.BlockSpec(Wp.shape, lambda i: (0, 0)))
        in_specs.append(pl.BlockSpec(bp.shape, lambda i: (0, 0)))
    out_spec = pl.BlockSpec((tm, out_pad), lambda i: (i, 0))

    # Advisory cost estimate (lets XLA schedule around the small custom call).
    param_bytes = sum(int(a.size) * a.dtype.itemsize for a in flat_params)
    flops = 2 * B * sum(int(W.shape[0]) * int(W.shape[1]) for W, _ in prepped_params)
    bytes_accessed = int(x.size) * x.dtype.itemsize + param_bytes + B * out_pad * 4
    cost = pl.CostEstimate(flops=flops, transcendentals=B * out_pad,
                           bytes_accessed=bytes_accessed)

    # VMEM budget: double-buffered x/out tiles + resident weights + h scratch + headroom.
    max_fo = max(int(W.shape[1]) for W, _ in prepped_params)
    vmem_needed = (2 * tm * in_dim * 4      # double-buffered f32 x tile
                   + 2 * tm * out_pad * 4   # double-buffered f32 out tile
                   + 2 * param_bytes        # weights/biases (conservative 2x)
                   + tm * max_fo * 4)       # widest f32 intermediate
    vmem_limit = int(min(64 << 20, max(vmem_needed + (8 << 20), 32 << 20)))

    kernel = functools.partial(_fused_head_kernel, num_layers=num_layers, out_dim=out_dim)

    out_padded = pl.pallas_call(
        kernel,
        out_shape=jax.ShapeDtypeStruct((B, out_pad), jnp.float32),
        grid=grid,
        in_specs=in_specs,
        out_specs=out_spec,
        compiler_params=pltpu.CompilerParams(
            dimension_semantics=("parallel",),   # megacore sharding on v7x
            vmem_limit_bytes=vmem_limit),
        cost_estimate=cost,
    )(x, *flat_params)

    return out_padded[:, :out_dim]


def _reference_forward(x_nchw, prepped_params, *, out_dim):
    """Pure-JAX reference using the same (bf16) weights, exact softmax."""
    B = x_nchw.shape[0]
    h = x_nchw.reshape(B, -1)
    L = len(prepped_params)
    for i, (W, b) in enumerate(prepped_params):
        h = jnp.dot(h.astype(jnp.bfloat16).astype(jnp.float32),
                    W.astype(jnp.float32)) + b
        if i < L - 1:
            h = jnp.maximum(h, 0.0)
    logits = h[:, :out_dim]
    return jax.nn.softmax(logits, axis=-1)


if __name__ == "__main__":
    # Small shapes consistent with the module: NCHW image flattened to in_dim.
    B, C, H, W = 2, 4, 16, 16
    in_dim = C * H * W           # 1024
    hidden_dim = 32
    out_dim = 10
    num_layers = 3

    key = jax.random.PRNGKey(0)
    kx, kp = jax.random.split(key)
    x = jax.random.normal(kx, (B, C, H, W), jnp.float32)
    params = init_mlp_params(kp, in_dim, out_dim, hidden_dim, num_layers)
    prepped = prep_params(params)

    fwd = jax.jit(functools.partial(mlpmixer_forward, out_dim=out_dim))
    out = fwd(x, prepped)
    out = jax.block_until_ready(out)

    ref = _reference_forward(x, prepped, out_dim=out_dim)

    assert out.shape == (B, out_dim)
    # Newton-refined reciprocal => rows sum to 1 tightly; probs match f32 reference
    # within bf16-matmul tolerance.
    assert jnp.allclose(jnp.sum(out, axis=1), 1.0, atol=1e-3)
    assert jnp.allclose(out, ref, atol=5e-3)

    print("KERNEL_OK")
</pallas_src>

<mosaic_0001>
module attributes {stable_mosaic.version = 11 : i64} {
  func.func @_fused_head_kernel(%arg0: i32, %arg1: memref<2x1024xf32, #tpu.memory_space<vmem>>, %arg2: memref<1024x32xbf16, #tpu.memory_space<vmem>>, %arg3: memref<1x32xf32, #tpu.memory_space<vmem>>, %arg4: memref<32x32xbf16, #tpu.memory_space<vmem>>, %arg5: memref<1x32xf32, #tpu.memory_space<vmem>>, %arg6: memref<32x128xbf16, #tpu.memory_space<vmem>>, %arg7: memref<1x128xf32, #tpu.memory_space<vmem>>, %arg8: memref<2x128xf32, #tpu.memory_space<vmem>>) attributes {dimension_semantics = [#tpu.dimension_semantics<parallel>], iteration_bounds = array<i64: 1>, scalar_prefetch = 0 : i64, scratch_operands = 0 : i64, tpu.core_type = #tpu.core_type<tc>, window_params = [{transform_indices = @transform_0, window_bounds = array<i64: 2, 1024>}, {pipeline_mode = #tpu.pipeline_mode<synchronous>, transform_indices = @transform_1, window_bounds = array<i64: 1024, 32>}, {pipeline_mode = #tpu.pipeline_mode<synchronous>, transform_indices = @transform_2, window_bounds = array<i64: 1, 32>}, {pipeline_mode = #tpu.pipeline_mode<synchronous>, transform_indices = @transform_3, window_bounds = array<i64: 32, 32>}, {pipeline_mode = #tpu.pipeline_mode<synchronous>, transform_indices = @transform_4, window_bounds = array<i64: 1, 32>}, {pipeline_mode = #tpu.pipeline_mode<synchronous>, transform_indices = @transform_5, window_bounds = array<i64: 32, 128>}, {pipeline_mode = #tpu.pipeline_mode<synchronous>, transform_indices = @transform_6, window_bounds = array<i64: 1, 128>}, {transform_indices = @transform_7, window_bounds = array<i64: 2, 128>}]} {
    %c0 = arith.constant 0 : index
    %c0_0 = arith.constant 0 : index
    %0 = vector.load %arg1[%c0, %c0_0] : memref<2x1024xf32, #tpu.memory_space<vmem>>, vector<2x1024xf32>
    %1 = arith.truncf %0 : vector<2x1024xf32> to vector<2x1024xbf16>
    %c0_1 = arith.constant 0 : index
    %c0_2 = arith.constant 0 : index
    %2 = vector.load %arg2[%c0_1, %c0_2] : memref<1024x32xbf16, #tpu.memory_space<vmem>>, vector<1024x32xbf16>
    %cst = arith.constant dense<0.000000e+00> : vector<2x32xf32>
    %3 = tpu.matmul %1, %2, %cst {dimension_numbers = #tpu.dot_dimension_numbers<[1], [0], [0], [1], [0, 0, 1, 1], [], []>} : vector<2x1024xbf16>, vector<1024x32xbf16>, vector<2x32xf32> -> vector<2x32xf32>
    %c0_3 = arith.constant 0 : index
    %c0_4 = arith.constant 0 : index
    %4 = vector.load %arg3[%c0_3, %c0_4] : memref<1x32xf32, #tpu.memory_space<vmem>>, vector<1x32xf32>
    %5 = vector.broadcast %4 : vector<1x32xf32> to vector<2x32xf32>
    %6 = arith.addf %3, %5 : vector<2x32xf32>
    %cst_5 = arith.constant 0.000000e+00 : f32
    %7 = vector.broadcast %cst_5 : f32 to vector<2x32xf32>
    %8 = arith.maximumf %6, %7 : vector<2x32xf32>
    %9 = arith.truncf %8 : vector<2x32xf32> to vector<2x32xbf16>
    %c0_6 = arith.constant 0 : index
    %c0_7 = arith.constant 0 : index
    %10 = vector.load %arg4[%c0_6, %c0_7] : memref<32x32xbf16, #tpu.memory_space<vmem>>, vector<32x32xbf16>
    %cst_8 = arith.constant dense<0.000000e+00> : vector<2x32xf32>
    %11 = tpu.matmul %9, %10, %cst_8 {dimension_numbers = #tpu.dot_dimension_numbers<[1], [0], [0], [1], [0, 0, 1, 1], [], []>} : vector<2x32xbf16>, vector<32x32xbf16>, vector<2x32xf32> -> vector<2x32xf32>
    %c0_9 = arith.constant 0 : index
    %c0_10 = arith.constant 0 : index
    %12 = vector.load %arg5[%c0_9, %c0_10] : memref<1x32xf32, #tpu.memory_space<vmem>>, vector<1x32xf32>
    %13 = vector.broadcast %12 : vector<1x32xf32> to vector<2x32xf32>
    %14 = arith.addf %11, %13 : vector<2x32xf32>
    %cst_11 = arith.constant 0.000000e+00 : f32
    %15 = vector.broadcast %cst_11 : f32 to vector<2x32xf32>
    %16 = arith.maximumf %14, %15 : vector<2x32xf32>
    %17 = arith.truncf %16 : vector<2x32xf32> to vector<2x32xbf16>
    %c0_12 = arith.constant 0 : index
    %c0_13 = arith.constant 0 : index
    %18 = vector.load %arg6[%c0_12, %c0_13] : memref<32x128xbf16, #tpu.memory_space<vmem>>, vector<32x128xbf16>
    %cst_14 = arith.constant dense<0.000000e+00> : vector<2x128xf32>
    %19 = tpu.matmul %17, %18, %cst_14 {dimension_numbers = #tpu.dot_dimension_numbers<[1], [0], [0], [1], [0, 0, 1, 1], [], []>} : vector<2x32xbf16>, vector<32x128xbf16>, vector<2x128xf32> -> vector<2x128xf32>
    %c0_15 = arith.constant 0 : index
    %c0_16 = arith.constant 0 : index
    %20 = vector.load %arg7[%c0_15, %c0_16] : memref<1x128xf32, #tpu.memory_space<vmem>>, vector<1x128xf32>
    %21 = vector.broadcast %20 : vector<1x128xf32> to vector<2x128xf32>
    %22 = arith.addf %19, %21 : vector<2x128xf32>
    %23 = tpu.iota {dimensions = array<i32: 1>} : vector<2x128xi32>
    %c10_i32 = arith.constant 10 : i32
    %24 = vector.broadcast %c10_i32 : i32 to vector<2x128xi32>
    %25 = arith.cmpi slt, %23, %24 : vector<2x128xi32>
    %cst_17 = arith.constant -1.000000e+30 : f32
    %26 = vector.broadcast %cst_17 : f32 to vector<2x128xf32>
    %27 = arith.select %25, %22, %26 : vector<2x128xi1>, vector<2x128xf32>
    %cst_18 = arith.constant dense<0xFF800000> : vector<2xf32>
    %28 = vector.multi_reduction <maximumf>, %27, %cst_18 [1] : vector<2x128xf32> to vector<2xf32>
    %29 = vector.shape_cast %28 : vector<2xf32> to vector<2x1xf32>
    %30 = vector.broadcast %29 : vector<2x1xf32> to vector<2x128xf32>
    %31 = arith.subf %27, %30 : vector<2x128xf32>
    %32 = math.exp %31 : vector<2x128xf32>
    %cst_19 = arith.constant dense<0.000000e+00> : vector<2xf32>
    %33 = vector.multi_reduction <add>, %32, %cst_19 [1] : vector<2x128xf32> to vector<2xf32>
    %34 = vector.shape_cast %33 : vector<2xf32> to vector<2x1xf32>
    %35 = tpu.reciprocal %34 {approx = true} : vector<2x1xf32> -> vector<2x1xf32>
    %36 = arith.mulf %34, %35 : vector<2x1xf32>
    %cst_20 = arith.constant 2.000000e+00 : f32
    %37 = vector.broadcast %cst_20 : f32 to vector<2x1xf32>
    %38 = arith.subf %37, %36 : vector<2x1xf32>
    %39 = arith.mulf %35, %38 : vector<2x1xf32>
    %40 = vector.broadcast %39 : vector<2x1xf32> to vector<2x128xf32>
    %41 = arith.mulf %32, %40 : vector<2x128xf32>
    %c0_21 = arith.constant 0 : index
    %c0_22 = arith.constant 0 : index
    %42 = vector.load %arg8[%c0_21, %c0_22] : memref<2x128xf32, #tpu.memory_space<vmem>>, vector<2x128xf32>
    tpu.vector_store %arg8[%c0_21, %c0_22], %41 {strides = array<i32>} : memref<2x128xf32, #tpu.memory_space<vmem>>, vector<2x128xf32>,
    return
  }
  func.func @transform_0(%arg0: i32) -> (i32, i32) {
    %c0_i32 = arith.constant 0 : i32
    %c0_i32_0 = arith.constant 0 : i32
    return %arg0, %c0_i32 : i32, i32
  }
  func.func @transform_1(%arg0: i32) -> (i32, i32) {
    %c0_i32 = arith.constant 0 : i32
    %c0_i32_0 = arith.constant 0 : i32
    %c0_i32_1 = arith.constant 0 : i32
    return %c0_i32, %c0_i32_0 : i32, i32
  }
  func.func @transform_2(%arg0: i32) -> (i32, i32) {
    %c0_i32 = arith.constant 0 : i32
    %c0_i32_0 = arith.constant 0 : i32
    %c0_i32_1 = arith.constant 0 : i32
    return %c0_i32, %c0_i32_0 : i32, i32
  }
  func.func @transform_3(%arg0: i32) -> (i32, i32) {
    %c0_i32 = arith.constant 0 : i32
    %c0_i32_0 = arith.constant 0 : i32
    %c0_i32_1 = arith.constant 0 : i32
    return %c0_i32, %c0_i32_0 : i32, i32
  }
  func.func @transform_4(%arg0: i32) -> (i32, i32) {
    %c0_i32 = arith.constant 0 : i32
    %c0_i32_0 = arith.constant 0 : i32
    %c0_i32_1 = arith.constant 0 : i32
    return %c0_i32, %c0_i32_0 : i32, i32
  }
  func.func @transform_5(%arg0: i32) -> (i32, i32) {
    %c0_i32 = arith.constant 0 : i32
    %c0_i32_0 = arith.constant 0 : i32
    %c0_i32_1 = arith.constant 0 : i32
    return %c0_i32, %c0_i32_0 : i32, i32
  }
  func.func @transform_6(%arg0: i32) -> (i32, i32) {
    %c0_i32 = arith.constant 0 : i32
    %c0_i32_0 = arith.constant 0 : i32
    %c0_i32_1 = arith.constant 0 : i32
    return %c0_i32, %c0_i32_0 : i32, i32
  }
  func.func @transform_7(%arg0: i32) -> (i32, i32) {
    %c0_i32 = arith.constant 0 : i32
    %c0_i32_0 = arith.constant 0 : i32
    return %arg0, %c0_i32 : i32, i32
  }
}

</mosaic_0001>

<bundles_post_ra>
// kernel: mlpmixer_forward.1
= control target key start
LH: loop header
LB: loop body
LE: loop exit
PB: predicated region body
PF: predicated region fallthrough
CT: control target
= control target key end

     0   :  { %v36_v28 = vlaneseq  ;;  %v1217_v36 = vmov 1983009808   ;;  %s1500_s0 = inlined_call_operand.vmem [shape: f32[2,1024], index: 0, kind: input, shape index: {}]   ;;  %s1501_s1 = inlined_call_operand.vmem [shape: bf16[1024,32], index: 1, kind: input, shape index: {}]   ;;  %s1502_s2 = inlined_call_operand.vmem [shape: f32[1,32], index: 2, kind: input, shape index: {}]   ;;  %s1503_s3 = inlined_call_operand.vmem [shape: bf16[32,32], index: 3, kind: input, shape index: {}]   ;;  %s1504_s4 = inlined_call_operand.vmem [shape: f32[1,32], index: 4, kind: input, shape index: {}]   ;;  %s1505_s5 = inlined_call_operand.vmem [shape: bf16[32,128], index: 5, kind: input, shape index: {}]   ;;  %s1506_s6 = inlined_call_operand.vmem [shape: f32[1,128], index: 6, kind: input, shape index: {}]   ;;  %s1507_s7 = inlined_call_operand.hbm [shape: f32[2,128], index: 7, kind: output, shape index: {}]  }
   0x1   :  { %v1119_v0 = vld [vmem:[%s1501_s1 + $0x40] sm:$0xff]   ;;  %v1123_v4 = vld [vmem:[%s1501_s1 + $0x48] sm:$0xff]   ;;  %v1127_v8 = vld [vmem:[%s1501_s1 + $0x50] sm:$0xff]   ;;  %v34_v37 = vunpack.c.l.s4 %v1217_v36 }
   0x2   :  { %v1120_v1 = vld [vmem:[%s1501_s1 + $0xc0] sm:$0xff]   ;;  %1005 = vmatprep.subr.bf16.mxu0 %v1119_v0  ;;  %v1124_v5 = vld [vmem:[%s1501_s1 + $0xc8] sm:$0xff]   ;;  %v1128_v9 = vld [vmem:[%s1501_s1 + $0xd0] sm:$0xff]   ;;  %v37_v33 = vshrl.u32 %v36_v28, 7 }
   0x3   :  { %v1121_v2 = vld [vmem:[%s1501_s1] sm:$0xff]   ;;  %1027 = vmatprep.subr.bf16.mxu1 %v1120_v1  ;;  %v1125_v6 = vld [vmem:[%s1501_s1 + $0x8] sm:$0xff]   ;;  %v1129_v10 = vld [vmem:[%s1501_s1 + $0x10] sm:$0xff]   ;;  %v35_v39 = vunpack.c.0.s8 %v34_v37 }
   0x4   :  { %v1122_v3 = vld [vmem:[%s1501_s1 + $0x80] sm:$0xff]   ;;  %1006 = vmatpush3.bf16.msra.mxu0 %v1121_v2  ;;  %v1126_v7 = vld [vmem:[%s1501_s1 + $0x88] sm:$0xff]   ;;  %v1130_v11 = vld [vmem:[%s1501_s1 + $0x90] sm:$0xff]  }
   0x5   :  { %1028 = vmatpush3.bf16.msra.mxu1 %v1122_v3  ;;  %1007 = vmatprep.subr.bf16.mxu0 %v1123_v4  ;;  %v1131_v12 = vld [vmem:[%s1501_s1 + $0x58] sm:$0xff]   ;;  %v1135_v16 = vld [vmem:[%s1501_s1 + $0x60] sm:$0xff]   ;;  %v1139_v20 = vld [vmem:[%s1501_s1 + $0x68] sm:$0xff]   ;;  %v1367_v41 = vsub.s32 %v35_v39, %v37_v33 }
   0x6   :  { %1029 = vmatprep.subr.bf16.mxu1 %v1124_v5  ;;  %v1132_v13 = vld [vmem:[%s1501_s1 + $0xd8] sm:$0xff]   ;;  %v1136_v17 = vld [vmem:[%s1501_s1 + $0xe0] sm:$0xff]   ;;  %v1140_v21 = vld [vmem:[%s1501_s1 + $0xe8] sm:$0xff]  }
   0x7   :  { %v1133_v14 = vld [vmem:[%s1501_s1 + $0x18] sm:$0xff]   ;;  %v1137_v18 = vld [vmem:[%s1501_s1 + $0x20] sm:$0xff]   ;;  %v1141_v22 = vld [vmem:[%s1501_s1 + $0x28] sm:$0xff]  }
   0x8   :  { %1008 = vmatpush3.bf16.msra.mxu0 %v1125_v6  ;;  %v1134_v15 = vld [vmem:[%s1501_s1 + $0x98] sm:$0xff]   ;;  %v1138_v19 = vld [vmem:[%s1501_s1 + $0xa0] sm:$0xff]   ;;  %v1142_v23 = vld [vmem:[%s1501_s1 + $0xa8] sm:$0xff]  }
   0x9   :  { %1030 = vmatpush3.bf16.msra.mxu1 %v1126_v7  ;;  %1009 = vmatprep.subr.bf16.mxu0 %v1127_v8  ;;  %v1143_v24 = vld [vmem:[%s1501_s1 + $0x70] sm:$0xff]   ;;  %v1147_v29 = vld [vmem:[%s1501_s1 + $0x78] sm:$0xff]   ;;  %v28_v34 = vld [vmem:[%s1500_s0] sm:$0xff] }
   0xa   :  { %1031 = vmatprep.subr.bf16.mxu1 %v1128_v9  ;;  %v1144_v25 = vld [vmem:[%s1501_s1 + $0xf0] sm:$0xff]   ;;  %v1148_v30 = vld [vmem:[%s1501_s1 + $0xf8] sm:$0xff]   ;;  %v1152_v35 = vld [vmem:[%s1501_s1 + $0x140] sm:$0xff]   ;;  %v32_v40 = vcombine.high %v28_v34, %v28_v34  ;;  %v39_v42 = vrot.slane %v28_v34, %v1367_v41 }
   0xb   :  { %v1145_v26 = vld [vmem:[%s1501_s1 + $0x30] sm:$0xff]   ;;  %v1149_v31 = vld [vmem:[%s1501_s1 + $0x38] sm:$0xff]   ;;  %v1153_v38 = vld [vmem:[%s1501_s1 + $0x1c0] sm:$0xff]  }
   0xc   :  { %1010 = vmatpush3.bf16.msra.mxu0 %v1129_v10  ;;  %v1146_v27 = vld [vmem:[%s1501_s1 + $0xb0] sm:$0xff]   ;;  %v1150_v32 = vld [vmem:[%s1501_s1 + $0xb8] sm:$0xff]   ;;  %v46_v43 = vrot.slane %v32_v40, %v1367_v41  ;;  %v47_v44 = vcombine.high %v39_v42, %v39_v42  ;;  %v1154_v46 = vld [vmem:[%s1501_s1 + $0x100] sm:$0xff]   ;;  %v74_v47 = vpack.c.bf16 %v39_v42, %v39_v42 }
   0xd   :  { %1032 = vmatpush3.bf16.msra.mxu1 %v1130_v11  ;;  %1011 = vmatprep.subr.bf16.mxu0 %v1131_v12  ;;  %v1155_v49 = vld [vmem:[%s1501_s1 + $0x180] sm:$0xff]   ;;  %v1156_v52 = vld [vmem:[%s1501_s1 + $0x148] sm:$0xff]   ;;  %v1160_v56 = vld [vmem:[%s1501_s1 + $0x150] sm:$0xff]  }
   0xe   :  { %1033 = vmatprep.subr.bf16.mxu1 %v1132_v13  ;;  %v48_v45 = vcombine.high %v46_v43, %v46_v43  ;;  %v76_v48 = vpack.c.bf16 %v46_v43, %v46_v43  ;;  %v75_v50 = vpack.c.bf16 %v47_v44, %v47_v44  ;;  %v1157_v53 = vld [vmem:[%s1501_s1 + $0x1c8] sm:$0xff]   ;;  %v1161_v57 = vld [vmem:[%s1501_s1 + $0x1d0] sm:$0xff]   ;;  %v1164_v60 = vld [vmem:[%s1501_s1 + $0x158] sm:$0xff]  }
   0xf   :  { %v1158_v54 = vld [vmem:[%s1501_s1 + $0x108] sm:$0xff]   ;;  %v1162_v58 = vld [vmem:[%s1501_s1 + $0x110] sm:$0xff]   ;;  %v1165_v61 = vld [vmem:[%s1501_s1 + $0x1d8] sm:$0xff]  }
  0x10   :  { %1012 = vmatpush3.bf16.msra.mxu0 %v1133_v14  ;;  %v77_v51 = vpack.c.bf16 %v48_v45, %v48_v45  ;;  %633 = vmatprep.mubr.bf16.mxu0 %v75_v50  ;;  %v1159_v55 = vld [vmem:[%s1501_s1 + $0x188] sm:$0xff]   ;;  %v1163_v59 = vld [vmem:[%s1501_s1 + $0x190] sm:$0xff]   ;;  %v1166_v62 = vld [vmem:[%s1501_s1 + $0x118] sm:$0xff]  }
  0x11   :  { %1034 = vmatpush3.bf16.msra.mxu1 %v1134_v15  ;;  %1013 = vmatprep.subr.bf16.mxu0 %v1135_v16  ;;  %v1167_v63 = vld [vmem:[%s1501_s1 + $0x198] sm:$0xff]   ;;  %v1168_v0 = vld [vmem:[%s1501_s1 + $0x160] sm:$0xff]   ;;  %v1172_v4 = vld [vmem:[%s1501_s1 + $0x168] sm:$0xff]  }
  0x12   :  { %1035 = vmatprep.subr.bf16.mxu1 %v1136_v17  ;;  %673 = vmatprep.mubr.bf16.mxu1 %v77_v51  ;;  %v1169_v1 = vld [vmem:[%s1501_s1 + $0x1e0] sm:$0xff]   ;;  %v1173_v5 = vld [vmem:[%s1501_s1 + $0x1e8] sm:$0xff]   ;;  %v1176_v8 = vld [vmem:[%s1501_s1 + $0x170] sm:$0xff]  }
  0x13   :  { %v1170_v2 = vld [vmem:[%s1501_s1 + $0x120] sm:$0xff]   ;;  %v1174_v6 = vld [vmem:[%s1501_s1 + $0x128] sm:$0xff]   ;;  %v1177_v9 = vld [vmem:[%s1501_s1 + $0x1f0] sm:$0xff]  }
  0x14   :  { %1014 = vmatpush3.bf16.msra.mxu0 %v1137_v18  ;;  %v1171_v3 = vld [vmem:[%s1501_s1 + $0x1a0] sm:$0xff]   ;;  %v1175_v7 = vld [vmem:[%s1501_s1 + $0x1a8] sm:$0xff]   ;;  %v1178_v11 = vld [vmem:[%s1501_s1 + $0x130] sm:$0xff]  }
  0x15   :  { %1036 = vmatpush3.bf16.msra.mxu1 %v1138_v19  ;;  %1015 = vmatprep.subr.bf16.mxu0 %v1139_v20  ;;  %v29_v10 = vld [vmem:[%s1500_s0 + $0x8] sm:$0xff]  ;;  %v1179_v14 = vld [vmem:[%s1501_s1 + $0x1b0] sm:$0xff]  }
  0x16   :  { %1037 = vmatprep.subr.bf16.mxu1 %v1140_v21  ;;  %v56_v12 = vrot.slane %v29_v10, %v1367_v41  ;;  %v49_v13 = vcombine.high %v29_v10, %v29_v10 }
  0x18   :  { %1016 = vmatpush3.bf16.msra.mxu0 %v1141_v22  ;;  %v64_v15 = vcombine.high %v56_v12, %v56_v12  ;;  %v63_v16 = vrot.slane %v49_v13, %v1367_v41 }
  0x19   :  { %1038 = vmatpush3.bf16.msra.mxu1 %v1142_v23  ;;  %1017 = vmatprep.subr.bf16.mxu0 %v1143_v24 }
  0x1a   :  { %1039 = vmatprep.subr.bf16.mxu1 %v1144_v25 }
  0x1c   :  { %1018 = vmatpush3.bf16.msra.mxu0 %v1145_v26 }
  0x1d   :  { %1040 = vmatpush3.bf16.msra.mxu1 %v1146_v27  ;;  %1019 = vmatprep.subr.bf16.mxu0 %v1147_v29 }
  0x1e   :  { %1041 = vmatprep.subr.bf16.mxu1 %v1148_v30 }
  0x20   :  { %1020 = vmatpush3.bf16.msra.mxu0 %v1149_v31 }
  0x21   :  { %1042 = vmatpush3.bf16.msra.mxu1 %v1150_v32  ;;  %1049 = vmatprep.subr.bf16.mxu0 %v1152_v35 }
  0x22   :  { %1071 = vmatprep.subr.bf16.mxu1 %v1153_v38 }
  0x23   :  { %634 = vmatmul.mubr.bf16.vlgmr.msra.gmra.mrb[0].mxu0 %v74_v47 }
  0x24   :  { %674 = vmatmul.mubr.bf16.vlgmr.msra.gmra.mrb[0].mxu1 %v76_v48  ;;  %1050 = vmatpush3.bf16.msra.mxu0 %v1154_v46 }
  0x25   :  { %1072 = vmatpush3.bf16.msra.mxu1 %v1155_v49  ;;  %1051 = vmatprep.subr.bf16.mxu0 %v1156_v52 }
  0x26   :  { %1073 = vmatprep.subr.bf16.mxu1 %v1157_v53 }
  0x28   :  { %1052 = vmatpush3.bf16.msra.mxu0 %v1158_v54 }
  0x29   :  { %1074 = vmatpush3.bf16.msra.mxu1 %v1159_v55  ;;  %1053 = vmatprep.subr.bf16.mxu0 %v1160_v56 }
  0x2a   :  { %1075 = vmatprep.subr.bf16.mxu1 %v1161_v57 }
  0x2c   :  { %1054 = vmatpush3.bf16.msra.mxu0 %v1162_v58 }
  0x2d   :  { %1076 = vmatpush3.bf16.msra.mxu1 %v1163_v59  ;;  %1055 = vmatprep.subr.bf16.mxu0 %v1164_v60 }
  0x2e   :  { %1077 = vmatprep.subr.bf16.mxu1 %v1165_v61 }
  0x30   :  { %1056 = vmatpush3.bf16.msra.mxu0 %v1166_v62 }
  0x31   :  { %1078 = vmatpush3.bf16.msra.mxu1 %v1167_v63  ;;  %1057 = vmatprep.subr.bf16.mxu0 %v1168_v0 }
  0x32   :  { %1079 = vmatprep.subr.bf16.mxu1 %v1169_v1 }
  0x34   :  { %1058 = vmatpush3.bf16.msra.mxu0 %v1170_v2 }
  0x35   :  { %1080 = vmatpush3.bf16.msra.mxu1 %v1171_v3  ;;  %1059 = vmatprep.subr.bf16.mxu0 %v1172_v4 }
  0x36   :  { %1081 = vmatprep.subr.bf16.mxu1 %v1173_v5 }
  0x38   :  { %1060 = vmatpush3.bf16.msra.mxu0 %v1174_v6 }
  0x39   :  { %1082 = vmatpush3.bf16.msra.mxu1 %v1175_v7 }
  0x3a   :  { %12 = vsyncpa [#allocation3], 0  ;;  %1061 = vmatprep.subr.bf16.mxu0 %v1176_v8  ;;  %1083 = vmatprep.subr.bf16.mxu1 %v1177_v9  ;;  %v1180_v17 = vld [vmem:[%s1501_s1 + $0x178] sm:$0xff]   ;;  %v79_v19 = vpack.c.bf16 %v64_v15, %v64_v15  ;;  %v65_v20 = vcombine.high %v63_v16, %v63_v16  ;;  %v78_v24 = vpack.c.bf16 %v56_v12, %v56_v12  ;;  %v1185_v26 = vld [vmem:[%s1503_s3] sm:$0xff]   ;;  %v1218_v27 = vmov 0.0  }
  0x3b   :  { %v1181_v18 = vld [vmem:[%s1501_s1 + $0x1f8] sm:$0xff]   ;;  %v80_v25 = vpack.c.bf16 %v63_v16, %v63_v16  ;;  %v1186_v29 = vld [vmem:[%s1503_s3 + $0x8] sm:$0xff]   ;;  %vm1219_vm0 = vmmov 0   ;;  %v1187_v30 = vld [vmem:[%s1505_s5] sm:$0xff]   ;;  %vm786_vm1 = vcmask 261120   ;;  %v899_v3 = vand.u32 127, %v36_v28 }
  0x3c   :  { %1062 = vmatpush3.bf16.msra.mxu0 %v1178_v11  ;;  %v1182_v21 = vld [vmem:[%s1501_s1 + $0x138] sm:$0xff]   ;;  %v81_v23 = vpack.c.bf16 %v65_v20, %v65_v20  ;;  %713 = vmatprep.mubr.bf16.mxu0 %v79_v19  ;;  %v932_v33 = vld [vmem:[%s1502_s2] ss:$0 sm:$0xff]  ;;  %v1188_v58 = vld [vmem:[%s1505_s5 + $0x8] sm:$0xff]   ;;  %vm902_vm3 = vcmask 1041408  }
  0x3d   :  { %1084 = vmatpush3.bf16.msra.mxu1 %v1179_v14  ;;  %v1183_v22 = vld [vmem:[%s1501_s1 + $0x1b8] sm:$0xff]   ;;  %1063 = vmatprep.subr.bf16.mxu0 %v1180_v17  ;;  %v997_v59 = vld [vmem:[%s1504_s4] ss:$0 sm:$0xff]  ;;  %vm900_vm2 = vcmp.lt.s32.totalorder %v899_v3, 10  ;;  %s1220_s4 = smov [#allocation2]  }
  0x3e   :  { %1085 = vmatprep.subr.bf16.mxu1 %v1181_v18  ;;  %753 = vmatprep.mubr.bf16.mxu1 %v81_v23  ;;  %v1001_v4 = vld [vmem:[%s1506_s6] ss:$0 sm:$0xff]  ;;  %s924_s5 = sshll.u32 %s1220_s4, 4  ;;  %s925_s5 = int_to_ptr.vmem [resolvable:$true] %s924_s5 }
  0x3f   :  { %s1193_s6 = scalar_lea.vmem %s925_s5, 32  ;;  %p1198_p1 = scmp.lt.s32.totalorder %s925_s5, %s925_s5 }
  0x40   :  { %1064 = vmatpush3.bf16.msra.mxu0 %v1182_v21  ;;  %p1194_p0 = scmp.ne.s32.totalorder %s925_s5, %s1193_s6  ;;  %p1199_p2 = scmp.lt.s32.totalorder %s1193_s6, %s1193_s6 }
  0x41   :  { %1086 = vmatpush3.bf16.msra.mxu1 %v1183_v22  ;;  %1099 = vmatprep.subr.bf16.mxu0 %v1218_v27 }
  0x42   :  { %1107 = vmatprep.subr.bf16.mxu1 %v1218_v27  ;;  %p1200_p3 = por %p1199_p2, %p1198_p1 }
  0x43   :  { %714 = vmatmul.mubr.bf16.vlgmr.msra.gmra.mrb[4].mxu0 %v78_v24 }
  0x44   :  { %754 = vmatmul.mubr.bf16.vlgmr.msra.gmra.mrb[4].mxu1 %v80_v25  ;;  %1100 = vmatpush3.bf16.msra.mxu0 %v1185_v26  ;;  %p1201_p4 = pnand %p1200_p3, %p1194_p0 }
  0x45   :  { %1101 = vmatprep.subr.bf16.mxu0 %v1218_v27  ;;  %1103 = vmatprep.mubr.msk.bf16.mxu0 %vm1219_vm0, %v1218_v27 }
  0x46   :  { %1111 = vmatprep.mubr.msk.bf16.mxu1 %vm1219_vm0, %v1218_v27  ;;  %1108 = vmatpush3.bf16.msra.mxu1 %v1187_v30 }
  0x47   :  { %1109 = vmatprep.subr.bf16.mxu1 %v1218_v27 }
  0x48   :  { %1102 = vmatpush3.bf16.msra.mxu0 %v1186_v29 }
  0x4a   :  { %1110 = vmatpush3.bf16.msra.mxu1 %v1188_v58 }
  0xf6   :  { %v1021_v31 = vpop.f32.mrb[0].mxu0 }
  0xf7   :  { %v1043_v32 = vpop.f32.mrb[0].mxu1  ;;  %v1022_v34 = vpop.f32.mrb[1].mxu0 }
  0xf8   :  { %v1044_v35 = vpop.f32.mrb[1].mxu1  ;;  %v1023_v36 = vadd.f32 %v1022_v34, %v1021_v31  ;;  %v1024_v38 = vpop.f32.mrb[2].mxu0 }
  0xf9   :  { %v1045_v37 = vadd.f32 %v1044_v35, %v1043_v32  ;;  %v1046_v39 = vpop.f32.mrb[2].mxu1  ;;  %v1025_v40 = vpop.f32.mrb[3].mxu0 }
  0xfa   :  { %v1047_v41 = vpop.f32.mrb[3].mxu1  ;;  %v636_v42 = vadd.f32 %v1023_v36, %v932_v33 }
  0xfc   :  { %v676_v43 = vadd.f32 %v1045_v37, %v636_v42 }
 0x116   :  { %v1065_v44 = vpop.f32.mrb[4].mxu0 }
 0x117   :  { %v1087_v45 = vpop.f32.mrb[4].mxu1  ;;  %v1066_v46 = vpop.f32.mrb[5].mxu0 }
 0x118   :  { %v1088_v47 = vpop.f32.mrb[5].mxu1  ;;  %v1067_v48 = vadd.f32 %v1066_v46, %v1065_v44  ;;  %v1068_v50 = vpop.f32.mrb[6].mxu0 }
 0x119   :  { %v1089_v49 = vadd.f32 %v1088_v47, %v1087_v45  ;;  %v1090_v51 = vpop.f32.mrb[6].mxu1  ;;  %v1069_v52 = vpop.f32.mrb[7].mxu0 }
 0x11a   :  { %v1091_v53 = vpop.f32.mrb[7].mxu1  ;;  %v716_v54 = vadd.f32 %v1067_v48, %v676_v43 }
 0x11c   :  { %v756_v55 = vadd.f32 %v1089_v49, %v716_v54 }
 0x11e   :  { %v761_v56 = vmax.f32 %v756_v55, 0.0 }
 0x120   :  { %v762_v57 = vpack.c.bf16 %v761_v56, %v761_v56 }
 0x122   :  { %1104 = vmatmul.mubr.msk.bf16.vlgmr.msra.gmra.mrb[8].mxu0 %vm786_vm1, %v762_v57 }
 0x1f5   :  { %v824_v60 = vpop.f32.mrb[8].mxu0 }
 0x1f6   :  { %v825_v61 = vadd.f32 %v997_v59, %v824_v60  ;;  %v1105_v62 = vpop.f32.mrb[9].mxu0 }
 0x1f7   :  { %v827_v63 = vpop.f32.mrb[10].mxu0 }
 0x1f8   :  { %v830_v0 = vmax.f32 %v825_v61, 0.0  ;;  %v1106_v1 = vpop.f32.mrb[11].mxu0 }
 0x1fa   :  { %v831_v2 = vpack.c.bf16 %v830_v0, %v830_v0 }
 0x1fc   :  { %1112 = vmatmul.mubr.msk.bf16.vlgmr.msra.gmra.mrb[8].mxu1 %vm786_vm1, %v831_v2 }
 0x2cf   :  { %v892_v5 = vpop.f32.mrb[8].mxu1 }
 0x2d0   :  { %v893_v6 = vadd.f32 %v1001_v4, %v892_v5  ;;  %v1113_v7 = vpop.f32.mrb[9].mxu1 }
 0x2d1   :  { %v895_v8 = vpop.f32.mrb[10].mxu1 }
 0x2d2   :  { %v1114_v9 = vpop.f32.mrb[11].mxu1  ;;  %v901_v10 = vsel %vm900_vm2, %v893_v6, -1e+30 }
 0x2d3   :  { %v903_v11 = vsel %vm902_vm3, %v901_v10, -inf }
 0x2d4   :  { %904 = vmax.xlane.f32.xlu0 %v903_v11 }
 0x361   :  { %v905_v12 = vpop.xlane.xlu0 %904 }
 0x362   :  { %v906_v13 = vsub.f32 %v901_v10, %v905_v12 }
 0x364   :  { %v907_v14 = vmul.f32 1.442695, %v906_v13 }
 0x366   :  { %1189 = vpow2.f32 %v907_v14 }
 0x370   :  { %v1190_v15 = vpop.eup %1189 }
 0x371   :  { %v909_v28 = vsel %vm902_vm3, %v1190_v15, 0.0 }
 0x372   :  { %910 = vadd.xlane.f32.xlu0 %v909_v28 }
 0x3ff   :  { %v911_v16 = vpop.xlane.xlu0 %910 }
 0x400   :  { %1191 = vrcp.f32 %v911_v16 }
 0x40a   :  { %v1192_v17 = vpop.eup %1191 }
 0x40b   :  { %v913_v18 = vmul.f32 %v1192_v17, %v911_v16 }
 0x40d   :  { %v914_v19 = vsub.f32 2.0, %v913_v18 }
 0x40f   :  { %v915_v20 = vmul.f32 %v1192_v17, %v914_v19 }
 0x411   :  { %v916_v21 = vmul.f32 %v1190_v15, %v915_v20 }
 0x413   :  { %917 = vst [vmem:[#allocation2] sm:$0x3] %v916_v21 }
 0x414   :  { %1204 = shalt.err (!%p1201_p4)
}
 0x415   :  { %s1205_s30 = scalar_lea.hbm %s1507_s7, 32 }
 0x416   :  { %p1206_p5 = scmp.ne.s32.totalorder %s1507_s7, %s1205_s30  ;;  %p1209_p6 = scmp.lt.u32.totalorder %s1205_s30, %s1507_s7 }
 0x418   :  { %p1211_p7 = pnand %p1209_p6, %p1206_p5 }
 0x41a   :  { %1214 = shalt.err (!%p1211_p7)
}
 0x41b   :  { %927 = dma.vmem_to_hbm [thread:$0]  %s925_s5, 32, %s1507_s7, [#allocation3]  }
 0x41c   :  { %1215 = dma.done.wait [#allocation3], 32  }
 0x41d   :  { %1216 = vsyncadd [#allocation3], 4294967264 }
 0x41e   :  { %931 = vsyncpa [#allocation3], 1 }

</bundles_post_ra>
